<compile_context>
chip_gen: v7x
topology: tpu7x:2x2x1
jax: 0.10.0
libtpu: 0.0.40
codegen_flags: <defaults>
</compile_context>

<pallas_src>
import functools

import jax
import jax.numpy as jnp
from jax import lax
from jax.experimental import pallas as pl
from jax.experimental.pallas import tpu as pltpu

LANE = 128
SUBLANE = 8
NCORES = 2          # v7x has 2 TensorCores; the extra axis is harmless on v5e/v6e
MAX_TM = 1024       # 512 KiB f32 / tile / input -> ~3 MiB VMEM total (fits v7x 64 MiB)


def _focal_kernel(o_ref, t_ref, sum_ref, cnt_ref, acc_ref, msk_ref, *,
                  gamma, ignore_index, eps, n_valid):
    c = pl.program_id(0)      # core-partition index ("parallel")
    i = pl.program_id(1)      # chunk index          ("arbitrary" reduction)
    n_i = pl.num_programs(1)
    tm, lane = o_ref.shape

    @pl.when(i == 0)
    def _():
        acc_ref[...] = jnp.zeros_like(acc_ref)
        msk_ref[...] = jnp.zeros_like(msk_ref)

    # Logical chunk handled at this step.  For "dead" chunks of the tail core and
    # for padded / partial-block rows every flat index is >= n_valid, so the whole
    # tile masks out below (the DMA itself is clamped in the index_map).
    chunk = c * n_i + i
    base = chunk * (tm * lane)
    row = lax.broadcasted_iota(jnp.int32, (tm, lane), 0)
    col = lax.broadcasted_iota(jnp.int32, (tm, lane), 1)
    in_bounds = (base + row * lane + col) < n_valid

    t_raw = t_ref[...]                       # int targets stay int for the compare
    mask = jnp.logical_and(in_bounds, t_raw != ignore_index)

    o = jnp.clip(o_ref[...].astype(jnp.float32), eps, 1.0 - eps)
    t = jnp.clip(t_raw.astype(jnp.float32), eps, 1.0 - eps)

    pt = (1.0 - t) * (1.0 - o) + t * o
    if float(gamma) == int(gamma):
        # integer gamma -> plain VPU multiplies, no extra EUP transcendentals
        focal_w = lax.integer_pow(1.0 - pt, int(gamma))
    else:
        focal_w = jnp.power(1.0 - pt, jnp.float32(gamma))
    loss = -focal_w * jnp.log(pt)

    # VPU-only per-step accumulation (jnp.where keeps garbage padded lanes NaN-safe).
    acc_ref[...] += jnp.where(mask, loss, 0.0)
    msk_ref[...] += mask.astype(jnp.float32)

    # Single cross-lane/cross-sublane reduction per core, written once into this
    # core's (8, 128) output block (only element [0, 0] is non-zero).
    @pl.when(i == n_i - 1)
    def _():
        first = jnp.logical_and(
            lax.broadcasted_iota(jnp.int32, (SUBLANE, lane), 0) == 0,
            lax.broadcasted_iota(jnp.int32, (SUBLANE, lane), 1) == 0)
        sum_ref[...] = jnp.where(first, jnp.sum(acc_ref[...]), 0.0)
        cnt_ref[...] = jnp.where(first, jnp.sum(msk_ref[...]), 0.0)


def focal_loss_2d(outputs, targets, gamma=2.0, ignore_index=255):
    """JAX/Pallas equivalent of FocalLoss2d.forward (returns a scalar)."""
    eps = 1e-08
    n = int(outputs.size)

    o = outputs.reshape(-1)      # no dtype cast here; kernel casts in VMEM
    t = targets.reshape(-1)      # targets keep their (integer) dtype

    # Pad only to a lane multiple when strictly necessary; padded elements are
    # masked in-kernel so the pad value is irrelevant.
    pad = (-n) % LANE
    if pad:
        o = jnp.pad(o, (0, pad))
        t = jnp.pad(t, (0, pad))
    rows = (n + pad) // LANE

    o2 = o.reshape(rows, LANE)
    t2 = t.reshape(rows, LANE)

    tm = min(MAX_TM, ((rows + SUBLANE - 1) // SUBLANE) * SUBLANE)
    chunks = pl.cdiv(rows, tm)
    chunks_per_core = pl.cdiv(chunks, NCORES)

    def in_index_map(c, i):
        # Clamp so DMA never starts past the end of the array; dead chunks are
        # fully masked inside the kernel via the logical flat index.
        return (jnp.minimum(c * chunks_per_core + i, chunks - 1), 0)

    kernel = functools.partial(
        _focal_kernel, gamma=float(gamma), ignore_index=ignore_index,
        eps=eps, n_valid=n)

    loss_sum, count = pl.pallas_call(
        kernel,
        out_shape=(
            jax.ShapeDtypeStruct((NCORES * SUBLANE, LANE), jnp.float32),
            jax.ShapeDtypeStruct((NCORES * SUBLANE, LANE), jnp.float32),
        ),
        grid_spec=pltpu.PrefetchScalarGridSpec(
            num_scalar_prefetch=0,
            grid=(NCORES, chunks_per_core),
            in_specs=[
                pl.BlockSpec((tm, LANE), in_index_map),
                pl.BlockSpec((tm, LANE), in_index_map),
            ],
            out_specs=[
                pl.BlockSpec((SUBLANE, LANE), lambda c, i: (c, 0)),
                pl.BlockSpec((SUBLANE, LANE), lambda c, i: (c, 0)),
            ],
            scratch_shapes=[
                pltpu.VMEM((tm, LANE), jnp.float32),   # loss accumulator
                pltpu.VMEM((tm, LANE), jnp.float32),   # valid-count accumulator
            ],
        ),
        compiler_params=pltpu.CompilerParams(
            dimension_semantics=("parallel", "arbitrary")),
    )(o2, t2)

    # Combine per-core partial sums; mean over non-ignored elements.
    # (count == 0 -> NaN, matching the PyTorch reference's empty-mean behavior.)
    return jnp.sum(loss_sum) / jnp.sum(count)


def _reference(outputs, targets, gamma=2.0, ignore_index=255):
    eps = 1e-08
    o = outputs.reshape(-1).astype(jnp.float32)
    t = targets.reshape(-1).astype(jnp.float32)
    mask = targets.reshape(-1) != ignore_index
    o = jnp.clip(o, eps, 1.0 - eps)
    t = jnp.clip(t, eps, 1.0 - eps)
    pt = (1.0 - t) * (1.0 - o) + t * o
    loss = -((1.0 - pt) ** gamma) * jnp.log(pt)
    return jnp.sum(jnp.where(mask, loss, 0.0)) / jnp.sum(mask.astype(jnp.float32))


if __name__ == "__main__":
    key = jax.random.PRNGKey(0)
    k1, k2, k3 = jax.random.split(key, 3)

    B, C, H, W = 2, 4, 16, 16  # NCHW, as in PyTorch

    # "outputs" are probabilities (post-sigmoid), as implied by the clamp to (0,1)
    outputs = jax.nn.sigmoid(jax.random.normal(k1, (B, C, H, W), dtype=jnp.float32))

    # binary targets with some ignored pixels (255), kept as int32
    tgt = jax.random.bernoulli(k2, 0.5, (B, C, H, W)).astype(jnp.int32)
    ignore_mask = jax.random.bernoulli(k3, 0.1, (B, C, H, W))
    targets = jnp.where(ignore_mask, 255, tgt).astype(jnp.int32)

    loss = focal_loss_2d(outputs, targets, gamma=2.0, ignore_index=255)
    loss = jax.block_until_ready(loss)

    ref = _reference(outputs, targets, gamma=2.0, ignore_index=255)
    assert jnp.allclose(loss, ref, rtol=1e-5, atol=1e-6), (loss, ref)

    print("KERNEL_OK")
</pallas_src>

<mosaic_0001>
module attributes {stable_mosaic.version = 11 : i64} {
  func.func @_focal_kernel(%arg0: i32, %arg1: i32, %arg2: memref<16x128xf32, #tpu.memory_space<vmem>>, %arg3: memref<16x128xi32, #tpu.memory_space<vmem>>, %arg4: memref<8x128xf32, #tpu.memory_space<vmem>>, %arg5: memref<8x128xf32, #tpu.memory_space<vmem>>, %arg6: memref<16x128xf32, #tpu.memory_space<vmem>>, %arg7: memref<16x128xf32, #tpu.memory_space<vmem>>) attributes {dimension_semantics = [#tpu.dimension_semantics<parallel>, #tpu.dimension_semantics<arbitrary>], iteration_bounds = array<i64: 2, 1>, scalar_prefetch = 0 : i64, scratch_operands = 2 : i64, tpu.core_type = #tpu.core_type<tc>, window_params = [{transform_indices = @transform_0, window_bounds = array<i64: 16, 128>}, {transform_indices = @transform_1, window_bounds = array<i64: 16, 128>}, {transform_indices = @transform_2, window_bounds = array<i64: 8, 128>}, {transform_indices = @transform_3, window_bounds = array<i64: 8, 128>}]} {
    %c0_i32 = arith.constant 0 : i32
    %0 = arith.cmpi eq, %arg1, %c0_i32 : i32
    %1 = arith.extui %0 : i1 to i32
    %c0_i32_0 = arith.constant 0 : i32
    %2 = arith.cmpi ne, %1, %c0_i32_0 : i32
    scf.if %2 {
      %cst_23 = arith.constant 0.000000e+00 : f32
      %56 = vector.broadcast %cst_23 : f32 to vector<16x128xf32>
      %c0_24 = arith.constant 0 : index
      %c0_25 = arith.constant 0 : index
      %57 = vector.load %arg6[%c0_24, %c0_25] : memref<16x128xf32, #tpu.memory_space<vmem>>, vector<16x128xf32>
      tpu.vector_store %arg6[%c0_24, %c0_25], %56 {strides = array<i32>} : memref<16x128xf32, #tpu.memory_space<vmem>>, vector<16x128xf32>,
      %cst_26 = arith.constant 0.000000e+00 : f32
      %58 = vector.broadcast %cst_26 : f32 to vector<16x128xf32>
      %c0_27 = arith.constant 0 : index
      %c0_28 = arith.constant 0 : index
      %59 = vector.load %arg7[%c0_27, %c0_28] : memref<16x128xf32, #tpu.memory_space<vmem>>, vector<16x128xf32>
      tpu.vector_store %arg7[%c0_27, %c0_28], %58 {strides = array<i32>} : memref<16x128xf32, #tpu.memory_space<vmem>>, vector<16x128xf32>,
    } else {
    }
    %c1_i32 = arith.constant 1 : i32
    %3 = arith.muli %arg0, %c1_i32 : i32
    %4 = arith.addi %3, %arg1 : i32
    %c2048_i32 = arith.constant 2048 : i32
    %5 = arith.muli %4, %c2048_i32 : i32
    %6 = tpu.iota {dimensions = array<i32: 0>} : vector<16x128xi32>
    %7 = tpu.iota {dimensions = array<i32: 1>} : vector<16x128xi32>
    %c128_i32 = arith.constant 128 : i32
    %8 = vector.broadcast %c128_i32 : i32 to vector<16x128xi32>
    %9 = arith.muli %6, %8 : vector<16x128xi32>
    %10 = vector.broadcast %5 : i32 to vector<16x128xi32>
    %11 = arith.addi %10, %9 : vector<16x128xi32>
    %12 = arith.addi %11, %7 : vector<16x128xi32>
    %c2048_i32_1 = arith.constant 2048 : i32
    %13 = vector.broadcast %c2048_i32_1 : i32 to vector<16x128xi32>
    %14 = arith.cmpi slt, %12, %13 : vector<16x128xi32>
    %c0 = arith.constant 0 : index
    %c0_2 = arith.constant 0 : index
    %15 = vector.load %arg3[%c0, %c0_2] : memref<16x128xi32, #tpu.memory_space<vmem>>, vector<16x128xi32>
    %c255_i32 = arith.constant 255 : i32
    %16 = vector.broadcast %c255_i32 : i32 to vector<16x128xi32>
    %17 = arith.cmpi ne, %15, %16 : vector<16x128xi32>
    %18 = arith.andi %14, %17 : vector<16x128xi1>
    %c0_3 = arith.constant 0 : index
    %c0_4 = arith.constant 0 : index
    %19 = vector.load %arg2[%c0_3, %c0_4] : memref<16x128xf32, #tpu.memory_space<vmem>>, vector<16x128xf32>
    %cst = arith.constant 9.99999993E-9 : f32
    %cst_5 = arith.constant 1.000000e+00 : f32
    %20 = vector.broadcast %cst : f32 to vector<16x128xf32>
    %21 = arith.maximumf %20, %19 : vector<16x128xf32>
    %22 = vector.broadcast %cst_5 : f32 to vector<16x128xf32>
    %23 = arith.minimumf %22, %21 : vector<16x128xf32>
    %24 = arith.sitofp %15 : vector<16x128xi32> to vector<16x128xf32>
    %cst_6 = arith.constant 9.99999993E-9 : f32
    %cst_7 = arith.constant 1.000000e+00 : f32
    %25 = vector.broadcast %cst_6 : f32 to vector<16x128xf32>
    %26 = arith.maximumf %25, %24 : vector<16x128xf32>
    %27 = vector.broadcast %cst_7 : f32 to vector<16x128xf32>
    %28 = arith.minimumf %27, %26 : vector<16x128xf32>
    %cst_8 = arith.constant 1.000000e+00 : f32
    %29 = vector.broadcast %cst_8 : f32 to vector<16x128xf32>
    %30 = arith.subf %29, %28 : vector<16x128xf32>
    %cst_9 = arith.constant 1.000000e+00 : f32
    %31 = vector.broadcast %cst_9 : f32 to vector<16x128xf32>
    %32 = arith.subf %31, %23 : vector<16x128xf32>
    %33 = arith.mulf %30, %32 : vector<16x128xf32>
    %34 = arith.mulf %28, %23 : vector<16x128xf32>
    %35 = arith.addf %33, %34 : vector<16x128xf32>
    %cst_10 = arith.constant 1.000000e+00 : f32
    %36 = vector.broadcast %cst_10 : f32 to vector<16x128xf32>
    %37 = arith.subf %36, %35 : vector<16x128xf32>
    %38 = arith.mulf %37, %37 : vector<16x128xf32>
    %cst_11 = arith.constant 0.000000e+00 : f32
    %39 = vector.broadcast %cst_11 : f32 to vector<16x128xf32>
    %40 = arith.subf %39, %38 : vector<16x128xf32>
    %41 = math.log %35 : vector<16x128xf32>
    %42 = arith.mulf %40, %41 : vector<16x128xf32>
    %c0_12 = arith.constant 0 : index
    %c0_13 = arith.constant 0 : index
    %43 = vector.load %arg6[%c0_12, %c0_13] : memref<16x128xf32, #tpu.memory_space<vmem>>, vector<16x128xf32>
    %cst_14 = arith.constant 0.000000e+00 : f32
    %44 = vector.broadcast %cst_14 : f32 to vector<16x128xf32>
    %45 = arith.select %18, %42, %44 : vector<16x128xi1>, vector<16x128xf32>
    %46 = arith.addf %43, %45 : vector<16x128xf32>
    %c0_15 = arith.constant 0 : index
    %c0_16 = arith.constant 0 : index
    %47 = vector.load %arg6[%c0_15, %c0_16] : memref<16x128xf32, #tpu.memory_space<vmem>>, vector<16x128xf32>
    tpu.vector_store %arg6[%c0_15, %c0_16], %46 {strides = array<i32>} : memref<16x128xf32, #tpu.memory_space<vmem>>, vector<16x128xf32>,
    %c0_17 = arith.constant 0 : index
    %c0_18 = arith.constant 0 : index
    %48 = vector.load %arg7[%c0_17, %c0_18] : memref<16x128xf32, #tpu.memory_space<vmem>>, vector<16x128xf32>
    %49 = arith.extui %18 : vector<16x128xi1> to vector<16x128xi32>
    %50 = arith.sitofp %49 : vector<16x128xi32> to vector<16x128xf32>
    %51 = arith.addf %48, %50 : vector<16x128xf32>
    %c0_19 = arith.constant 0 : index
    %c0_20 = arith.constant 0 : index
    %52 = vector.load %arg7[%c0_19, %c0_20] : memref<16x128xf32, #tpu.memory_space<vmem>>, vector<16x128xf32>
    tpu.vector_store %arg7[%c0_19, %c0_20], %51 {strides = array<i32>} : memref<16x128xf32, #tpu.memory_space<vmem>>, vector<16x128xf32>,
    %c0_i32_21 = arith.constant 0 : i32
    %53 = arith.cmpi eq, %arg1, %c0_i32_21 : i32
    %54 = arith.extui %53 : i1 to i32
    %c0_i32_22 = arith.constant 0 : i32
    %55 = arith.cmpi ne, %54, %c0_i32_22 : i32
    scf.if %55 {
      %56 = tpu.iota {dimensions = array<i32: 0>} : vector<8x128xi32>
      %c0_i32_23 = arith.constant 0 : i32
      %57 = vector.broadcast %c0_i32_23 : i32 to vector<8x128xi32>
      %58 = arith.cmpi eq, %56, %57 : vector<8x128xi32>
      %59 = tpu.iota {dimensions = array<i32: 1>} : vector<8x128xi32>
      %c0_i32_24 = arith.constant 0 : i32
      %60 = vector.broadcast %c0_i32_24 : i32 to vector<8x128xi32>
      %61 = arith.cmpi eq, %59, %60 : vector<8x128xi32>
      %62 = arith.andi %58, %61 : vector<8x128xi1>
      %c0_25 = arith.constant 0 : index
      %c0_26 = arith.constant 0 : index
      %63 = vector.load %arg6[%c0_25, %c0_26] : memref<16x128xf32, #tpu.memory_space<vmem>>, vector<16x128xf32>
      %64 = vector.shape_cast %63 : vector<16x128xf32> to vector<1x16x128xf32>
      %cst_27 = arith.constant dense<0.000000e+00> : vector<1xf32>
      %65 = vector.multi_reduction <add>, %64, %cst_27 [1, 2] : vector<1x16x128xf32> to vector<1xf32>
      %66 = vector.shape_cast %65 : vector<1xf32> to vector<1x1x1xf32>
      %67 = vector.extract %66[0, 0, 0] : f32 from vector<1x1x1xf32>
      %cst_28 = arith.constant 0.000000e+00 : f32
      %68 = vector.broadcast %67 : f32 to vector<8x128xf32>
      %69 = vector.broadcast %cst_28 : f32 to vector<8x128xf32>
      %70 = arith.select %62, %68, %69 : vector<8x128xi1>, vector<8x128xf32>
      %c0_29 = arith.constant 0 : index
      %c0_30 = arith.constant 0 : index
      %71 = vector.load %arg4[%c0_29, %c0_30] : memref<8x128xf32, #tpu.memory_space<vmem>>, vector<8x128xf32>
      tpu.vector_store %arg4[%c0_29, %c0_30], %70 {strides = array<i32>} : memref<8x128xf32, #tpu.memory_space<vmem>>, vector<8x128xf32>,
      %c0_31 = arith.constant 0 : index
      %c0_32 = arith.constant 0 : index
      %72 = vector.load %arg7[%c0_31, %c0_32] : memref<16x128xf32, #tpu.memory_space<vmem>>, vector<16x128xf32>
      %73 = vector.shape_cast %72 : vector<16x128xf32> to vector<1x16x128xf32>
      %cst_33 = arith.constant dense<0.000000e+00> : vector<1xf32>
      %74 = vector.multi_reduction <add>, %73, %cst_33 [1, 2] : vector<1x16x128xf32> to vector<1xf32>
      %75 = vector.shape_cast %74 : vector<1xf32> to vector<1x1x1xf32>
      %76 = vector.extract %75[0, 0, 0] : f32 from vector<1x1x1xf32>
      %cst_34 = arith.constant 0.000000e+00 : f32
      %77 = vector.broadcast %76 : f32 to vector<8x128xf32>
      %78 = vector.broadcast %cst_34 : f32 to vector<8x128xf32>
      %79 = arith.select %62, %77, %78 : vector<8x128xi1>, vector<8x128xf32>
      %c0_35 = arith.constant 0 : index
      %c0_36 = arith.constant 0 : index
      %80 = vector.load %arg5[%c0_35, %c0_36] : memref<8x128xf32, #tpu.memory_space<vmem>>, vector<8x128xf32>
      tpu.vector_store %arg5[%c0_35, %c0_36], %79 {strides = array<i32>} : memref<8x128xf32, #tpu.memory_space<vmem>>, vector<8x128xf32>,
    } else {
    }
    return
  }
  func.func @transform_0(%arg0: i32, %arg1: i32) -> (i32, i32) {
    %c1_i32 = arith.constant 1 : i32
    %0 = arith.muli %arg0, %c1_i32 : i32
    %1 = arith.addi %0, %arg1 : i32
    %c0_i32 = arith.constant 0 : i32
    %2 = arith.minsi %1, %c0_i32 : i32
    %c0_i32_0 = arith.constant 0 : i32
    %c0_i32_1 = arith.constant 0 : i32
    return %2, %c0_i32_0 : i32, i32
  }
  func.func @transform_1(%arg0: i32, %arg1: i32) -> (i32, i32) {
    %c1_i32 = arith.constant 1 : i32
    %0 = arith.muli %arg0, %c1_i32 : i32
    %1 = arith.addi %0, %arg1 : i32
    %c0_i32 = arith.constant 0 : i32
    %2 = arith.minsi %1, %c0_i32 : i32
    %c0_i32_0 = arith.constant 0 : i32
    %c0_i32_1 = arith.constant 0 : i32
    return %2, %c0_i32_0 : i32, i32
  }
  func.func @transform_2(%arg0: i32, %arg1: i32) -> (i32, i32) {
    %c0_i32 = arith.constant 0 : i32
    %c0_i32_0 = arith.constant 0 : i32
    return %arg0, %c0_i32 : i32, i32
  }
  func.func @transform_3(%arg0: i32, %arg1: i32) -> (i32, i32) {
    %c0_i32 = arith.constant 0 : i32
    %c0_i32_0 = arith.constant 0 : i32
    return %arg0, %c0_i32 : i32, i32
  }
}

</mosaic_0001>

<bundles_post_ra>
// kernel: tpu_custom_call.1
= control target key start
LH: loop header
LB: loop body
LE: loop exit
PB: predicated region body
PF: predicated region fallthrough
CT: control target
= control target key end

     0   :  { %9 = vsyncpa [#allocation5], 0  ;;  %s1179_s0 = inlined_call_operand.hbm [shape: f32[16,128], index: 0, kind: input, shape index: {}]   ;;  %s1180_s1 = inlined_call_operand.hbm [shape: s32[16,128], index: 1, kind: input, shape index: {}]   ;;  %s1181_s2 = inlined_call_operand.hbm [shape: f32[16,128], index: 2, kind: output, shape index: {0}]   ;;  %s1182_s3 = inlined_call_operand.hbm [shape: f32[16,128], index: 3, kind: output, shape index: {1}]  }
   0x1   :  { %11 = vsyncpa [#allocation5 + $0x1], 0 }
   0x2   :  { %12 = vsyncpa [#allocation8], 0 }
   0x3   :  { %14 = vsyncpa [#allocation8 + $0x1], 0 }
   0x4   :  { %15 = vsyncpa [#allocation6], 0 }
   0x5   :  { %17 = vsyncpa [#allocation6 + $0x1], 0 }
   0x6   :  { %18 = vsyncpa [#allocation11], 0 }
   0x7   :  { %20 = vsyncpa [#allocation11 + $0x1], 0  ;;  %s922_s12 = smov 0   ;;  %s924_s13 = smov 0  }
   0x8   :  { %s926_s14 = smov 0   ;;  %s928_s15 = smov 0  }
   0x9   :  { %s930_s16 = smov 0   ;;  %s932_s17 = smov 0  }
   0xa   :  { %s934_s18 = smov 0   ;;  %s936_s19 = smov 0  }
   0xb LB: > { %s561_s20 = sadd.s32 4294967295, %s893_s19   ;;  %s562_s21 = sadd.s32 4294967294, %s893_s19   ;;  %s893_s19 = sphi %s936_s19, %s26_s19   ;;  %s889_s18 = sphi %s934_s18, %s1203_s18   ;;  %s885_s17 = sphi %s932_s17, %s1202_s17   ;;  %s881_s16 = sphi %s930_s16, %s1169_s16   ;;  %s877_s15 = sphi %s928_s15, %s1201_s15   ;;  %s873_s14 = sphi %s926_s14, %s1200_s14   ;;  %s869_s13 = sphi %s924_s13, %s1199_s13   ;;  %s865_s12 = sphi %s922_s12, %s1198_s12  }
   0xc   : > { %s38_s22 = sadd.s32 1, %s889_s18  ;;  %p862_p1 = scmp.ne.s32.totalorder %s881_s16, 0 }
   0xd   : > { %p40_p0 = scmp.ge.s32.totalorder %s38_s22, 2  ;;  %p59_p2 = scmp.eq.s32.totalorder %s893_s19, 0 }
   0xe   : > { %p64_p3 = scmp.ne.s32.totalorder %s881_s16, %s877_s15  ;;  %p65_p5 = scmp.eq.s32.totalorder %s561_s20, 0 }
   0xf   : > { %s1205_s22 = smov (%p40_p0, %s38_s22), 0  ;;  %p968_p4 = por %p862_p1, %p59_p2 }
  0x10   : > { %p972_p6 = por %p65_p5, %p64_p3  ;;  %s106_s25 = ssub.s32 %s889_s18, %s1205_s22 }
  0x11   : > { %p107_p7 = scmp.eq.s32.totalorder %s106_s25, 0  ;;  %s109_s26 = sadd.s32 1, %s873_s14 }
  0x12   : > { %s1186_s24 = scalar_select %p972_p6, 1, 0 }
  0x13   : > { %s980_s27 = scalar_select %p107_p7, %s873_s14, %s109_s26  }
  0x14   : > { %p119_p8 = scmp.ne.s32.totalorder %s873_s14, %s869_s13  ;;  %p120_p9 = scmp.eq.s32.totalorder %s561_s20, 1 }
  0x15   : > { %p125_p10 = scmp.ne.s32.totalorder %s869_s13, %s865_s12  ;;  %p126_p11 = scmp.eq.s32.totalorder %s562_s21, 1 }
  0x16   : > { %p986_p12 = por %p120_p9, %p119_p8  ;;  %p613_p1 = scmp.lt.s32.totalorder %s893_s19, 2 }
  0x17   : > { %p991_p0 = por %p126_p11, %p125_p10  ;;  %s895_s30 = smov [#allocation4]  }
  0x18   : > { %s1187_s28 = scalar_select %p986_p12, 1, 0 }
  0x19   : > { %s1188_s29 = scalar_select %p991_p0, 1, 0 }
  0x1a   : > { %s186_s4 = sshll.u32 %s895_s30, 4  ;;  %p998_p2 = pnand %p613_p1, %p968_p4  ;;  %s187_s4 = int_to_ptr.vmem [resolvable:$true] %s186_s4 }
  0x1b   : > { %s694_s8 = scalar_lea.hbm %s1179_s0, 256 }
  0x1c   : > { %p695_p3 = scmp.ne.s32.totalorder %s1179_s0, %s694_s8  ;;  %p696_p5 = pneg %p998_p2 }
  0x1d   : > { %p701_p8 = scmp.lt.u32.totalorder %s694_s8, %s694_s8  ;;  %p703_p9 = scmp.lt.u32.totalorder %s694_s8, %s1179_s0 }
  0x1e   : > { %p697_p7 = pnand %p696_p5, %p695_p3 }
  0x1f   : > { %p704_p10 = por %p703_p9, %p701_p8 }
  0x20   : > { %p698_p4 = pneg %p697_p7 }
  0x22   : > { %p705_p11 = pnand %p704_p10, %p698_p4 }
  0x24   : > { %708 = shalt.err (!%p705_p11)
}
  0x25   : > { %s709_s20 = scalar_lea.vmem %s187_s4, 256  ;;  %s716_s21 = scalar_lea.vmem %s187_s4, 512 }
  0x26   : > { %p710_p1 = scmp.ne.s32.totalorder %s187_s4, %s709_s20  ;;  %p717_p12 = scmp.lt.s32.totalorder %s187_s4, %s187_s4 }
  0x27   : > { %p718_p6 = scmp.lt.s32.totalorder %s716_s21, %s709_s20 }
  0x28   : > { %p712_p13 = pnand %p710_p1, %p696_p5 }
  0x29   : > { %p719_p3 = por %p718_p6, %p717_p12 }
  0x2a   : > { %p713_p0 = pneg %p712_p13 }
  0x2c   : > { %p720_p7 = pnand %p719_p3, %p713_p0 }
  0x2e   : > { %723 = shalt.err (!%p720_p7)
}
  0x2f   : > { %s896_s23 = smov 128   ;;  %s897_s25 = smov 8  }
  0x30   : > { %602 = dma.hbm_to_vmem [thread:$0]  (!%p998_p2), %s1179_s0, 256, %s187_s4, [#allocation5], %s896_s23, %s896_s23, %s897_s25  }
  0x31   : > { %p571_p13 = scmp.ge.s32.totalorder %s893_s19, 1  ;;  %p218_p4 = scmp.lt.s32.totalorder %s893_s19, 3 }
  0x32   : > { %s898_s7 = smov [#allocation7]   ;;  %s724_s11 = scalar_lea.hbm %s1180_s1, 256 }
  0x33   : > { %p1029_p8 = pnand %p571_p13, %p218_p4  ;;  %s210_s8 = sshll.u32 %s898_s7, 4  ;;  %s211_s8 = int_to_ptr.vmem [resolvable:$true] %s210_s8 }
  0x34   : > { %p725_p6 = scmp.ne.s32.totalorder %s1180_s1, %s724_s11  ;;  %p731_p9 = scmp.lt.u32.totalorder %s724_s11, %s724_s11 }
  0x35   : > { %s1190_s6 = scalar_select %p1029_p8, 1, 0 }
  0x36   : > { %p727_p12 = pnand %p725_p6, %p696_p5  ;;  %p733_p10 = scmp.lt.u32.totalorder %s724_s11, %s1180_s1 }
  0x38   : > { %p728_p0 = pneg %p727_p12  ;;  %p734_p11 = por %p733_p10, %p731_p9 }
  0x3a   : > { %p735_p1 = pnand %p734_p11, %p728_p0 }
  0x3c   : > { %738 = shalt.err (!%p735_p1)
}
  0x3d   : > { %s739_s26 = scalar_lea.vmem %s211_s8, 256  ;;  %s746_s30 = scalar_lea.vmem %s211_s8, 512 }
  0x3e   : > { %p740_p3 = scmp.ne.s32.totalorder %s211_s8, %s739_s26  ;;  %p747_p4 = scmp.lt.s32.totalorder %s211_s8, %s211_s8 }
  0x3f   : > { %p748_p8 = scmp.lt.s32.totalorder %s746_s30, %s739_s26 }
  0x40   : > { %p742_p7 = pnand %p740_p3, %p696_p5 }
  0x41   : > { %p749_p6 = por %p748_p8, %p747_p4 }
  0x42   : > { %p743_p13 = pneg %p742_p7 }
  0x44   : > { %p750_p12 = pnand %p749_p6, %p743_p13 }
  0x46   : > { %753 = shalt.err (!%p750_p12)
}
  0x47   : > { %605 = dma.hbm_to_vmem [thread:$0]  (!%p998_p2), %s1180_s1, 256, %s211_s8, [#allocation8], %s896_s23, %s896_s23, %s897_s25  }
  0x48   : > { %p1191_p0 = scmp.ne.s32.totalorder %s1190_s6, 0 }
  0x49   : > { %s224_s10 = sand.u32 (!%p1191_p0), 1, %s881_s16   ;;  %p1192_p5 = scmp.ne.s32.totalorder (!%p1191_p0), %s1186_s24, 0 }
  0x4a   : > { %222 = sbr.rel (%p1191_p0) target bundleno = 365 (0x16d), region = 28  ;;  %s572_s11 = sshll.u32 (!%p1191_p0), %s224_s10, 4 }
  0x4b   : > { %s225_s15 = scalar_lea.sflag (!%p1191_p0), [#allocation5], %s224_s10  ;;  %s228_s20 = scalar_lea.vmem (!%p1191_p0), [#allocation4], %s572_s11 }
  0x51   : > { %847 = dma.done.wait (%p1192_p5), %s225_s15, 256  }
  0x52   : > { %849 = vsyncadd (%p1192_p5), %s225_s15, 4294967040  ;;  %s234_s5 = scalar_lea.sflag [#allocation8], %s224_s10  ;;  %s237_s4 = scalar_lea.vmem [#allocation7], %s572_s11 }
  0x53   : > { %851 = dma.done.wait (%p1192_p5), %s234_s5, 256  }
  0x54   : > { %853 = vsyncadd (%p1192_p5), %s234_s5, 4294967040  ;;  %v288_v0 = vlaneseq  ;;  %v302_v1 = vld [vmem:[%s237_s4] sm:$0xff]  ;;  %v303_v2 = vld [vmem:[%s237_s4 + $0x8] sm:$0xff]  ;;  %s576_s24 = sshll.u32 %s885_s17, 11  ;;  %v899_v49 = vmov 0.0   ;;  %s1073_s23 = sand.u32 1, %s869_s13  }
  0x55   : > { %v308_v3 = vld [vmem:[%s228_s20] sm:$0xff]  ;;  %v309_v4 = vld [vmem:[%s228_s20 + $0x8] sm:$0xff]  ;;  %v314_v7 = vcvt.s32.f32 %v302_v1  ;;  %v315_v8 = vcvt.s32.f32 %v303_v2  ;;  %v295_v27 = vstv %s576_s24  ;;  %vm304_vm1 = vcmp.ne.s32.totalorder %v302_v1, 255  ;;  %s574_s25 = sshll.u32 %s1073_s23, 3  ;;  %s581_s6 = sshll.u32 %s885_s17, 7 }
  0x56   : > { %v310_v5 = vmax.f32 %v308_v3, 1e-08  ;;  %v311_v6 = vmax.f32 %v309_v4, 1e-08  ;;  %v1067_v9 = vshrl.u32 %v288_v0, 7  ;;  %v292_v30 = vand.u32 127, %v288_v0  ;;  %s1090_s11 = scalar_lea.hbm %s1181_s2, %s581_s6  ;;  %s1097_s20 = scalar_lea.hbm %s1182_s3, %s581_s6 }
  0x57   : > { %v316_v12 = vmax.f32 %v314_v7, 1e-08  ;;  %v317_v13 = vmax.f32 %v315_v8, 1e-08  ;;  %vm305_vm3 = vcmp.ne.s32.totalorder %v303_v2, 255  ;;  %s262_s8 = scalar_lea.vmem [#allocation9], %s574_s25 }
  0x58   : > { %v312_v10 = vmin.f32 %v310_v5, 1.0  ;;  %v313_v11 = vmin.f32 %v311_v6, 1.0  ;;  %v290_v18 = vadd.s32 8, %v1067_v9  ;;  %v293_v25 = vmul.u32 128, %v1067_v9  ;;  %s415_s21 = sshll.u32 %s262_s8, 4  ;;  %s1082_s30 = scalar_lea.vmem [#allocation10], %s574_s25  ;;  %s1092_s21 = int_to_ptr.vmem [resolvable:$true] %s415_s21 }
  0x59   : > { %v318_v14 = vmin.f32 %v316_v12, 1.0  ;;  %v319_v15 = vmin.f32 %v317_v13, 1.0  ;;  %vm363_vm6 = vcmp.eq.s32.totalorder %v1067_v9, 0  ;;  %vm364_vm7 = vcmp.eq.s32.totalorder %v292_v30, 0  ;;  %s428_s7 = sshll.u32 %s1082_s30, 4  ;;  %s397_s4 = scalar_lea.sflag [#allocation6], %s1073_s23  ;;  %s1101_s7 = int_to_ptr.vmem [resolvable:$true] %s428_s7 }
  0x5a   : > { %v322_v16 = vsub.f32 1.0, %v312_v10  ;;  %v323_v17 = vsub.f32 1.0, %v313_v11  ;;  %v294_v26 = vmul.u32 128, %v290_v18  ;;  %v296_v31 = vadd.s32 %v295_v27, %v293_v25  ;;  %vm1077_vm8 = vmand %vm363_vm6, %vm364_vm7  ;;  %s754_s24 = scalar_lea.vmem %s1092_s21, 128  ;;  %p1195_p8 = scmp.ne.s32.totalorder %s1187_s28, 0 }
  0x5b   : > { %v320_v19 = vsub.f32 1.0, %v318_v14  ;;  %v321_v20 = vsub.f32 1.0, %v319_v15  ;;  %v326_v21 = vmul.f32 %v318_v14, %v312_v10  ;;  %v327_v22 = vmul.f32 %v319_v15, %v313_v11  ;;  %p755_p2 = scmp.ne.s32.totalorder %s1092_s21, %s754_s24  ;;  %s900_s25 = smov [#allocation9]  }
  0x5c   : > { %v297_v33 = vadd.s32 %v295_v27, %v294_v26  ;;  %v298_v35 = vadd.s32 %v296_v31, %v292_v30 }
  0x5d   : > { %v324_v23 = vmul.f32 %v322_v16, %v320_v19  ;;  %v325_v24 = vmul.f32 %v323_v17, %v321_v20  ;;  %p756_p9 = pnand %p755_p2, %p1195_p8 }
  0x5e   : > { %v299_v37 = vadd.s32 %v297_v33, %v292_v30  ;;  %vm300_vm0 = vcmp.lt.s32.totalorder %v298_v35, 2048 }
  0x5f   : > { %v328_v28 = vadd.f32 %v326_v21, %v324_v23  ;;  %v329_v29 = vadd.f32 %v327_v22, %v325_v24  ;;  %vm306_vm4 = vmand %vm300_vm0, %vm304_vm1  ;;  %p757_p10 = pneg %p756_p9 }
  0x60   : > { %vm301_vm2 = vcmp.lt.s32.totalorder %v299_v37, 2048  ;;  %v577_v50 = vsel %vm306_vm4, 1.0, %v899_v49 }
  0x61   : > { %690 = vlog2.f32 %v328_v28  ;;  %v330_v32 = vsub.f32 1.0, %v328_v28  ;;  %v331_v34 = vsub.f32 1.0, %v329_v29  ;;  %vm307_vm5 = vmand %vm301_vm2, %vm305_vm3 }
  0x62   : > { %692 = vlog2.f32 %v329_v29  ;;  %v578_v51 = vsel %vm307_vm5, 1.0, %v899_v49 }
  0x63   : > { %v332_v36 = vmul.f32 %v330_v32, %v330_v32  ;;  %v333_v38 = vmul.f32 %v331_v34, %v331_v34  ;;  %v383_v53 = vadd.f32 %v578_v51, %v577_v50 }
  0x65   : > { %v334_v39 = vsub.f32 0.0, %v332_v36  ;;  %v335_v41 = vsub.f32 0.0, %v333_v38 }
  0x6b   : > { %v691_v40 = vpop.eup %690 }
  0x6c   : > { %v693_v42 = vpop.eup %692  ;;  %v337_v43 = vmul.f32 0.6931472, %v691_v40 }
  0x6d   : > { %v339_v44 = vmul.f32 0.6931472, %v693_v42 }
  0x6e   : > { %v340_v45 = vmul.f32 %v337_v43, %v334_v39 }
  0x6f   : > { %v341_v46 = vmul.f32 %v339_v44, %v335_v41 }
  0x70   : > { %v344_v47 = vsel %vm306_vm4, %v340_v45, 0.0 }
  0x71   : > { %v345_v48 = vsel %vm307_vm5, %v341_v46, 0.0 }
  0x72   : > { %v368_v52 = vadd.f32 %v345_v48, %v344_v47 }
  0x74   : > { %369 = vadd.xlane.f32.xlu0 %v368_v52 }
  0x78   : > { %384 = vadd.xlane.f32.xlu0 %v383_v53 }
 0x101   : > { %v370_v54 = vpop.xlane.xlu0 %369 }
 0x102   : > { %v371_v55 = vrot.slane %v370_v54, 4 }
 0x104   : > { %v372_v56 = vadd.f32 %v371_v55, %v370_v54 }
 0x105   : > { %v385_v57 = vpop.xlane.xlu0 %384 }
 0x106   : > { %v373_v58 = vrot.slane %v372_v56, 2  ;;  %v386_v59 = vrot.slane %v385_v57, 4 }
 0x108   : > { %v387_v60 = vadd.f32 %v386_v59, %v385_v57  ;;  %v374_v61 = vadd.f32 %v373_v58, %v372_v56 }
 0x10a   : > { %v388_v62 = vrot.slane %v387_v60, 2  ;;  %v375_v63 = vrot.slane %v374_v61, 1 }
 0x10c   : > { %v389_v0 = vadd.f32 %v388_v62, %v387_v60  ;;  %v376_v1 = vadd.f32 %v375_v63, %v374_v61 }
 0x10e   : > { %587 = vpush %v376_v1  ;;  %v390_v2 = vrot.slane %v389_v0, 1 }
 0x110   : > { %v391_v3 = vadd.f32 %v390_v2, %v389_v0 }
 0x112   : > { %589 = vpush %v391_v3 }
 0x13f   : > { %s588_s26 = spop %587 }
 0x140   : > { %v378_v5 = vstv %s588_s26  ;;  %s758_s26 = sshll.u32 %s900_s25, 4  ;;  %s759_s26 = int_to_ptr.vmem [resolvable:$false] %s758_s26 }
 0x141   : > { %v379_v6 = vsel %vm1077_vm8, %v378_v5, 0.0  ;;  %p761_p11 = scmp.lt.s32.totalorder %s1092_s21, %s759_s26 }
 0x142   : > { %380 = vst [vmem:[%s262_s8] sm:$0xff] %v379_v6  ;;  %s760_s8 = scalar_lea.vmem %s759_s26, 256 }
 0x143   : > { %s1099_s5 = spop %589  ;;  %p762_p1 = scmp.lt.s32.totalorder %s760_s8, %s754_s24 }
 0x144   : > { %v393_v7 = vstv %s1099_s5 }
 0x145   : > { %p763_p3 = por %p762_p1, %p761_p11 }
 0x147   : > { %p764_p7 = pnand %p763_p3, %p757_p10 }
 0x149   : > { %767 = shalt.err (!%p764_p7)
}
 0x14a   : > { %s768_s6 = scalar_lea.hbm %s1090_s11, 128  ;;  %s772_s17 = scalar_lea.hbm %s1181_s2, 256 }
 0x14b   : > { %p769_p13 = scmp.ne.s32.totalorder %s1090_s11, %s768_s6  ;;  %p773_p12 = scmp.lt.u32.totalorder %s1090_s11, %s1181_s2 }
 0x14c   : > { %p774_p0 = scmp.lt.u32.totalorder %s772_s17, %s768_s6  ;;  %p776_p2 = scmp.lt.u32.totalorder %s768_s6, %s1090_s11 }
 0x14d   : > { %p770_p4 = pnand %p769_p13, %p1195_p8 }
 0x14e   : > { %p775_p5 = por %p774_p0, %p773_p12 }
 0x14f   : > { %p771_p6 = pneg %p770_p4 }
 0x150   : > { %p777_p9 = por %p776_p2, %p775_p5 }
 0x152   : > { %p778_p10 = pnand %p777_p9, %p771_p6 }
 0x154   : > { %781 = shalt.err (!%p778_p10)
}
 0x155   : > { %595 = dma.vmem_to_hbm [thread:$0]  (%p1195_p8), %s1092_s21, 128, %s1090_s11, %s397_s4   ;;  %v394_v8 = vsel %vm1077_vm8, %v393_v7, 0.0 }
 0x156   : > { %395 = vst [vmem:[%s1082_s30] sm:$0xff] %v394_v8  ;;  %s402_s24 = scalar_lea.sflag [#allocation11], %s1073_s23  ;;  %s782_s25 = scalar_lea.vmem %s1101_s7, 128 }
 0x157   : > { %p783_p11 = scmp.ne.s32.totalorder %s1101_s7, %s782_s25  ;;  %s901_s26 = smov [#allocation10]  }
 0x158   : > { %s786_s8 = sshll.u32 %s901_s26, 4  ;;  %s787_s8 = int_to_ptr.vmem [resolvable:$false] %s786_s8 }
 0x159   : > { %p784_p1 = pnand %p783_p11, %p1195_p8  ;;  %s788_s6 = scalar_lea.vmem %s787_s8, 256 }
 0x15a   : > { %p789_p7 = scmp.lt.s32.totalorder %s1101_s7, %s787_s8  ;;  %p790_p13 = scmp.lt.s32.totalorder %s788_s6, %s782_s25 }
 0x15b   : > { %p785_p3 = pneg %p784_p1 }
 0x15c   : > { %p791_p4 = por %p790_p13, %p789_p7 }
 0x15e   : > { %p792_p6 = pnand %p791_p4, %p785_p3 }
 0x160   : > { %795 = shalt.err (!%p792_p6)
}
 0x161   : > { %s796_s23 = scalar_lea.hbm %s1097_s20, 128  ;;  %s800_s11 = scalar_lea.hbm %s1182_s3, 256 }
 0x162   : > { %p797_p12 = scmp.ne.s32.totalorder %s1097_s20, %s796_s23  ;;  %p801_p2 = scmp.lt.u32.totalorder %s1097_s20, %s1182_s3 }
 0x163   : > { %p802_p9 = scmp.lt.u32.totalorder %s800_s11, %s796_s23  ;;  %p804_p11 = scmp.lt.u32.totalorder %s796_s23, %s1097_s20 }
 0x164   : > { %p798_p0 = pnand %p797_p12, %p1195_p8 }
 0x165   : > { %p803_p10 = por %p802_p9, %p801_p2 }
 0x166   : > { %p799_p5 = pneg %p798_p0 }
 0x167   : > { %p805_p1 = por %p804_p11, %p803_p10 }
 0x169   : > { %p806_p3 = pnand %p805_p1, %p799_p5 }
 0x16b   : > { %809 = shalt.err (!%p806_p3)
}
 0x16c   : > { %596 = dma.vmem_to_hbm [thread:$0]  (%p1195_p8), %s1101_s7, 128, %s1097_s20, %s402_s24  }
 0x16d PF: > { %s440_s10 = sand.u32 1, %s865_s12   ;;  %p1196_p7 = scmp.ne.s32.totalorder %s1188_s29, 0 }
 0x16e   : > { %p1197_p13 = scmp.ge.s32.totalorder %s893_s19, 2  ;;  %s441_s17 = scalar_lea.sflag [#allocation6], %s440_s10 }
 0x170   : > { %p607_p4 = pnand %p1197_p13, %p1196_p7 }
 0x172   : > { %855 = dma.done.wait (!%p607_p4), %s441_s17, 128  }
 0x173   : > { %857 = vsyncadd (!%p607_p4), %s441_s17, 4294967168  ;;  %s450_s15 = scalar_lea.sflag [#allocation11], %s440_s10 }
 0x174   : > { %859 = dma.done.wait (!%p607_p4), %s450_s15, 128  }
 0x175   : > { %861 = vsyncadd (!%p607_p4), %s450_s15, 4294967168  ;;  %s26_s19 = sadd.s32 1, %s893_s19   ;;  %s1198_s12 = smov %s869_s13 }
 0x176   : > { %p23_p6 = scmp.ge.s32.totalorder %s26_s19, 4   ;;  %s1199_s13 = smov %s873_s14 }
 0x177   : > { %s1200_s14 = smov %s980_s27  ;;  %s1201_s15 = smov %s881_s16 }
 0x178   : > { %s1169_s16 = smov 0   ;;  %s1202_s17 = smov %s889_s18 }
 0x179   : > { %s1203_s18 = smov %s1205_s22  ;;  %25 = sbr.rel (!%p23_p6) target bundleno = 11 (0xb), region = 111 }
 0x180   :  { %455 = vsyncpa [#allocation5], 1 }
 0x181   :  { %457 = vsyncpa [#allocation5 + $0x1], 1 }
 0x182   :  { %458 = vsyncpa [#allocation8], 1 }
 0x183   :  { %460 = vsyncpa [#allocation8 + $0x1], 1 }
 0x184   :  { %461 = vsyncpa [#allocation6], 1 }
 0x185   :  { %463 = vsyncpa [#allocation6 + $0x1], 1 }
 0x186   :  { %464 = vsyncpa [#allocation11], 1 }
 0x187   :  { %466 = vsyncpa [#allocation11 + $0x1], 1 }

</bundles_post_ra>
